<compile_context>
chip_gen: v6e
topology: v6e:2x2x1
jax: 0.10.0
libtpu: 0.0.40
codegen_flags: <defaults>
</compile_context>

<pallas_src>
import jax
import jax.numpy as jnp
from jax.experimental import pallas as pl
from jax.experimental.pallas import tpu as pltpu


def lstm_seq_kernel(xw_ref, wh_ref, b_ref, h0_ref, c0_ref,
                    h_out_ref, c_out_ref, h_sc, c_sc):
    """One timestep of the codenn LSTM; grid = (batch_blocks, T).

    xw_ref   : [1, bb, 4*out]   precomputed x_t @ W_x for this (batch, t) tile
    wh_ref   : [out, 4*out]     fused recurrent weights (VMEM-resident)
    b_ref    : [1, 4*out]       fused (i2h + h2h) bias (VMEM-resident)
    h0_ref   : [bb, out]        initial hidden state for this batch block
    c0_ref   : [bb, out]        initial cell state for this batch block
    h_out_ref: [1, bb, out]     next_h for this (batch, t) tile
    c_out_ref: [1, bb, out]     next_c for this (batch, t) tile
    h_sc/c_sc: [bb, out] f32    carried state, lives in VMEM across the grid
    """
    t = pl.program_id(1)
    out_dim = c_sc.shape[-1]

    # (Re-)initialize the carried state at the start of each batch block.
    @pl.when(t == 0)
    def _():
        h_sc[...] = h0_ref[...].astype(jnp.float32)
        c_sc[...] = c0_ref[...].astype(jnp.float32)

    # Single fused recurrent MXU matmul (N = 4*out, lane-dense) + hoisted
    # input projection + bias.  f32 accumulation regardless of operand dtype.
    z = (jnp.dot(h_sc[...].astype(wh_ref.dtype), wh_ref[...],
                 preferred_element_type=jnp.float32)
         + xw_ref[0].astype(jnp.float32)
         + b_ref[...].astype(jnp.float32))

    # One EUP pass over all four gate pre-activations; gates are static slices.
    gates = jax.nn.sigmoid(z)
    in_gate     = gates[:, 0 * out_dim:1 * out_dim]
    forget_gate = gates[:, 1 * out_dim:2 * out_dim]
    in_gate2    = gates[:, 2 * out_dim:3 * out_dim]
    out_gate    = gates[:, 3 * out_dim:4 * out_dim]

    next_c = forget_gate * c_sc[...] + in_gate * in_gate2
    # Module quirk reproduced exactly: '+' (not the classic '*').
    next_h = out_gate + jnp.tanh(next_c)

    # Carry state in VMEM; emit this step's outputs (separate leading-axis
    # outputs -> no concat, every store starts at lane 0).
    h_sc[...] = next_h
    c_sc[...] = next_c
    h_out_ref[0] = next_h.astype(h_out_ref.dtype)
    c_out_ref[0] = next_c.astype(c_out_ref.dtype)


def fuse_params(wi, wh, b_i2h, b_h2h):
    """wi:[4,in,out], wh:[4,out,out], biases:[4,out]
       -> (W_x [in,4*out], W_h [out,4*out], b [1,4*out]), gate order
       (in, forget, in2, out)."""
    n_gates, in_dim, out_dim = wi.shape
    w_x = jnp.transpose(wi, (1, 0, 2)).reshape(in_dim, n_gates * out_dim)
    w_h = jnp.transpose(wh, (1, 0, 2)).reshape(out_dim, n_gates * out_dim)
    b = (b_i2h + b_h2h).reshape(1, n_gates * out_dim)
    return w_x, w_h, b


def lstm_sequence(x_seq, h0, c0, params, *, compute_dtype=jnp.float32,
                  batch_block=None):
    """Run the cell over a [T, B, in] sequence with the recurrence in-kernel.

    params = (W_x [in,4*out], W_h [out,4*out], b [1,4*out]).
    Returns (h_seq [T,B,out], c_seq [T,B,out]).
    For production, pass compute_dtype=jnp.bfloat16 (gate math stays f32).
    """
    w_x, w_h, b = params
    T, B, in_dim = x_seq.shape
    out_dim = h0.shape[-1]
    n4 = 4 * out_dim
    bb = B if batch_block is None else batch_block
    assert B % bb == 0, "batch_block must divide batch"

    # Hoisted, time-independent input projection at MXU-friendly M = T*B.
    xw = jnp.dot(x_seq.reshape(T * B, in_dim).astype(compute_dtype),
                 w_x.astype(compute_dtype),
                 preferred_element_type=jnp.float32).reshape(T, B, n4)
    w_h_c = w_h.astype(compute_dtype)
    b_f32 = b.astype(jnp.float32)
    h0_f32 = h0.astype(jnp.float32)
    c0_f32 = c0.astype(jnp.float32)

    grid = (B // bb, T)

    itemsize_w = jnp.dtype(compute_dtype).itemsize
    flops = 2 * T * B * out_dim * n4 + 10 * T * B * out_dim
    transcendentals = 5 * T * B * out_dim            # 4*sigmoid + tanh per elt
    bytes_accessed = (4 * xw.size + itemsize_w * w_h_c.size + 4 * b_f32.size
                      + 4 * (h0.size + c0.size) + 4 * 2 * T * B * out_dim)

    h_seq, c_seq = pl.pallas_call(
        lstm_seq_kernel,
        out_shape=(jax.ShapeDtypeStruct((T, B, out_dim), jnp.float32),
                   jax.ShapeDtypeStruct((T, B, out_dim), jnp.float32)),
        grid_spec=pltpu.PrefetchScalarGridSpec(
            num_scalar_prefetch=0,
            grid=grid,
            in_specs=[
                pl.BlockSpec((1, bb, n4), lambda bi, t: (t, bi, 0)),        # xw
                pl.BlockSpec((out_dim, n4), lambda bi, t: (0, 0)),          # W_h (resident)
                pl.BlockSpec((1, n4), lambda bi, t: (0, 0)),                # bias (resident)
                pl.BlockSpec((bb, out_dim), lambda bi, t: (bi, 0)),         # h0
                pl.BlockSpec((bb, out_dim), lambda bi, t: (bi, 0)),         # c0
            ],
            out_specs=[
                pl.BlockSpec((1, bb, out_dim), lambda bi, t: (t, bi, 0)),   # h_seq
                pl.BlockSpec((1, bb, out_dim), lambda bi, t: (t, bi, 0)),   # c_seq
            ],
            scratch_shapes=[pltpu.VMEM((bb, out_dim), jnp.float32),         # carried h
                            pltpu.VMEM((bb, out_dim), jnp.float32)],        # carried c
        ),
        compiler_params=pltpu.CompilerParams(
            dimension_semantics=("parallel", "arbitrary")),
        cost_estimate=pl.CostEstimate(flops=int(flops),
                                      transcendentals=int(transcendentals),
                                      bytes_accessed=int(bytes_accessed)),
    )(xw, w_h_c, b_f32, h0_f32, c0_f32)

    return h_seq, c_seq


def lstm_cell(x, prev_h, prev_c, params):
    """Exactly the PyTorch module's forward: one cell step (T = 1)."""
    h_seq, c_seq = lstm_sequence(x[None], prev_h, prev_c, params)
    return h_seq[0], c_seq[0]


# ---------------------------------------------------------------------------
# Pure-JAX references mirroring the PyTorch forward exactly.
# ---------------------------------------------------------------------------
def lstm_cell_ref(x, prev_h, prev_c, wi, wh, b_i2h, b_h2h):
    def gate(k):
        return jax.nn.sigmoid(x @ wi[k] + b_i2h[k] + prev_h @ wh[k] + b_h2h[k])
    in_gate, forget_gate, in_gate2, out_gate = gate(0), gate(1), gate(2), gate(3)
    next_c = forget_gate * prev_c + in_gate * in_gate2
    next_h = out_gate + jnp.tanh(next_c)
    return next_h, next_c


def lstm_sequence_ref(x_seq, h0, c0, wi, wh, b_i2h, b_h2h):
    h, c = h0, c0
    hs, cs = [], []
    for t in range(x_seq.shape[0]):
        h, c = lstm_cell_ref(x_seq[t], h, c, wi, wh, b_i2h, b_h2h)
        hs.append(h)
        cs.append(c)
    return jnp.stack(hs), jnp.stack(cs)


if __name__ == "__main__":
    # Full-precision host matmuls so the reference comparison is meaningful.
    jax.config.update("jax_default_matmul_precision", "highest")

    in_dim, out_dim, batch, seq_len = 16, 32, 8, 8   # 4*out_dim = 128 (lane-dense)

    key = jax.random.PRNGKey(0)
    keys = jax.random.split(key, 8)

    # 4 gates x (i2h weight [in,out], h2h weight [out,out], i2h/h2h bias [out]),
    # pre-transposed to [in,out] so everything is plain x @ W + b.
    wi = 0.1 * jax.random.normal(keys[0], (4, in_dim, out_dim), jnp.float32)
    wh = 0.1 * jax.random.normal(keys[1], (4, out_dim, out_dim), jnp.float32)
    b_i2h = 0.1 * jax.random.normal(keys[2], (4, out_dim), jnp.float32)
    b_h2h = 0.1 * jax.random.normal(keys[3], (4, out_dim), jnp.float32)

    x_seq = jax.random.normal(keys[4], (seq_len, batch, in_dim), jnp.float32)
    h0 = jax.random.normal(keys[5], (batch, out_dim), jnp.float32)
    c0 = jax.random.normal(keys[6], (batch, out_dim), jnp.float32)

    params = fuse_params(wi, wh, b_i2h, b_h2h)

    # 1) Single cell step == the PyTorch module's forward.
    h1, c1 = lstm_cell(x_seq[0], h0, c0, params)
    jax.block_until_ready((h1, c1))
    rh1, rc1 = lstm_cell_ref(x_seq[0], h0, c0, wi, wh, b_i2h, b_h2h)
    assert jnp.allclose(h1, rh1, atol=1e-4, rtol=1e-4)
    assert jnp.allclose(c1, rc1, atol=1e-4, rtol=1e-4)

    # 2) Full sequence: recurrence carried in VMEM inside one pallas_call.
    h_seq, c_seq = lstm_sequence(x_seq, h0, c0, params)
    jax.block_until_ready((h_seq, c_seq))
    rh_seq, rc_seq = lstm_sequence_ref(x_seq, h0, c0, wi, wh, b_i2h, b_h2h)
    assert jnp.allclose(h_seq, rh_seq, atol=1e-4, rtol=1e-4)
    assert jnp.allclose(c_seq, rc_seq, atol=1e-4, rtol=1e-4)

    print("KERNEL_OK")
</pallas_src>

<mosaic_0001>
module attributes {stable_mosaic.version = 11 : i64} {
  func.func @lstm_seq_kernel(%arg0: i32, %arg1: i32, %arg2: memref<1x8x128xf32, #tpu.memory_space<vmem>>, %arg3: memref<32x128xf32, #tpu.memory_space<vmem>>, %arg4: memref<1x128xf32, #tpu.memory_space<vmem>>, %arg5: memref<8x32xf32, #tpu.memory_space<vmem>>, %arg6: memref<8x32xf32, #tpu.memory_space<vmem>>, %arg7: memref<1x8x32xf32, #tpu.memory_space<vmem>>, %arg8: memref<1x8x32xf32, #tpu.memory_space<vmem>>, %arg9: memref<8x32xf32, #tpu.memory_space<vmem>>, %arg10: memref<8x32xf32, #tpu.memory_space<vmem>>) attributes {dimension_semantics = [#tpu.dimension_semantics<parallel>, #tpu.dimension_semantics<arbitrary>], iteration_bounds = array<i64: 1, 1>, scalar_prefetch = 0 : i64, scratch_operands = 2 : i64, tpu.core_type = #tpu.core_type<tc>, window_params = [{transform_indices = @transform_0, window_bounds = array<i64: 1, 8, 128>}, {pipeline_mode = #tpu.pipeline_mode<synchronous>, transform_indices = @transform_1, window_bounds = array<i64: 32, 128>}, {pipeline_mode = #tpu.pipeline_mode<synchronous>, transform_indices = @transform_2, window_bounds = array<i64: 1, 128>}, {transform_indices = @transform_3, window_bounds = array<i64: 8, 32>}, {transform_indices = @transform_4, window_bounds = array<i64: 8, 32>}, {transform_indices = @transform_5, window_bounds = array<i64: 1, 8, 32>}, {transform_indices = @transform_6, window_bounds = array<i64: 1, 8, 32>}]} {
    %c0_i32 = arith.constant 0 : i32
    %0 = arith.cmpi eq, %arg1, %c0_i32 : i32
    %1 = arith.extui %0 : i1 to i32
    %c0_i32_0 = arith.constant 0 : i32
    %2 = arith.cmpi ne, %1, %c0_i32_0 : i32
    scf.if %2 {
      %c0_22 = arith.constant 0 : index
      %c0_23 = arith.constant 0 : index
      %35 = vector.load %arg5[%c0_22, %c0_23] : memref<8x32xf32, #tpu.memory_space<vmem>>, vector<8x32xf32>
      %c0_24 = arith.constant 0 : index
      %c0_25 = arith.constant 0 : index
      %36 = vector.load %arg9[%c0_24, %c0_25] : memref<8x32xf32, #tpu.memory_space<vmem>>, vector<8x32xf32>
      tpu.vector_store %arg9[%c0_24, %c0_25], %35 {strides = array<i32>} : memref<8x32xf32, #tpu.memory_space<vmem>>, vector<8x32xf32>,
      %c0_26 = arith.constant 0 : index
      %c0_27 = arith.constant 0 : index
      %37 = vector.load %arg6[%c0_26, %c0_27] : memref<8x32xf32, #tpu.memory_space<vmem>>, vector<8x32xf32>
      %c0_28 = arith.constant 0 : index
      %c0_29 = arith.constant 0 : index
      %38 = vector.load %arg10[%c0_28, %c0_29] : memref<8x32xf32, #tpu.memory_space<vmem>>, vector<8x32xf32>
      tpu.vector_store %arg10[%c0_28, %c0_29], %37 {strides = array<i32>} : memref<8x32xf32, #tpu.memory_space<vmem>>, vector<8x32xf32>,
    } else {
    }
    %c0 = arith.constant 0 : index
    %c0_1 = arith.constant 0 : index
    %3 = vector.load %arg9[%c0, %c0_1] : memref<8x32xf32, #tpu.memory_space<vmem>>, vector<8x32xf32>
    %c0_2 = arith.constant 0 : index
    %c0_3 = arith.constant 0 : index
    %4 = vector.load %arg3[%c0_2, %c0_3] : memref<32x128xf32, #tpu.memory_space<vmem>>, vector<32x128xf32>
    %cst = arith.constant dense<0.000000e+00> : vector<8x128xf32>
    %5 = tpu.matmul %3, %4, %cst {dimension_numbers = #tpu.dot_dimension_numbers<[1], [0], [0], [1], [0, 0, 1, 1], [], []>, precision = #tpu.contract_precision<fp32>} : vector<8x32xf32>, vector<32x128xf32>, vector<8x128xf32> -> vector<8x128xf32>
    %c0_4 = arith.constant 0 : index
    %c0_5 = arith.constant 0 : index
    %c0_6 = arith.constant 0 : index
    %6 = vector.load %arg2[%c0_4, %c0_5, %c0_6] : memref<1x8x128xf32, #tpu.memory_space<vmem>>, vector<1x8x128xf32>
    %7 = vector.shape_cast %6 : vector<1x8x128xf32> to vector<8x128xf32>
    %8 = arith.addf %5, %7 : vector<8x128xf32>
    %c0_7 = arith.constant 0 : index
    %c0_8 = arith.constant 0 : index
    %9 = vector.load %arg4[%c0_7, %c0_8] : memref<1x128xf32, #tpu.memory_space<vmem>>, vector<1x128xf32>
    %10 = vector.broadcast %9 : vector<1x128xf32> to vector<8x128xf32>
    %11 = arith.addf %8, %10 : vector<8x128xf32>
    %12 = arith.negf %11 : vector<8x128xf32>
    %13 = math.exp %12 : vector<8x128xf32>
    %cst_9 = arith.constant 1.000000e+00 : f32
    %14 = vector.broadcast %cst_9 : f32 to vector<8x128xf32>
    %15 = arith.addf %14, %13 : vector<8x128xf32>
    %16 = arith.divf %14, %15 : vector<8x128xf32>
    %17 = vector.extract_strided_slice %16 {offsets = [0, 0], sizes = [8, 32], strides = [1, 1]} : vector<8x128xf32> to vector<8x32xf32>
    %18 = vector.extract_strided_slice %16 {offsets = [0, 32], sizes = [8, 32], strides = [1, 1]} : vector<8x128xf32> to vector<8x32xf32>
    %19 = vector.extract_strided_slice %16 {offsets = [0, 64], sizes = [8, 32], strides = [1, 1]} : vector<8x128xf32> to vector<8x32xf32>
    %20 = vector.extract_strided_slice %16 {offsets = [0, 96], sizes = [8, 32], strides = [1, 1]} : vector<8x128xf32> to vector<8x32xf32>
    %c0_10 = arith.constant 0 : index
    %c0_11 = arith.constant 0 : index
    %21 = vector.load %arg10[%c0_10, %c0_11] : memref<8x32xf32, #tpu.memory_space<vmem>>, vector<8x32xf32>
    %22 = arith.mulf %18, %21 : vector<8x32xf32>
    %23 = arith.mulf %17, %19 : vector<8x32xf32>
    %24 = arith.addf %22, %23 : vector<8x32xf32>
    %25 = math.tanh %24 : vector<8x32xf32>
    %26 = arith.addf %20, %25 : vector<8x32xf32>
    %c0_12 = arith.constant 0 : index
    %c0_13 = arith.constant 0 : index
    %27 = vector.load %arg9[%c0_12, %c0_13] : memref<8x32xf32, #tpu.memory_space<vmem>>, vector<8x32xf32>
    tpu.vector_store %arg9[%c0_12, %c0_13], %26 {strides = array<i32>} : memref<8x32xf32, #tpu.memory_space<vmem>>, vector<8x32xf32>,
    %c0_14 = arith.constant 0 : index
    %c0_15 = arith.constant 0 : index
    %28 = vector.load %arg10[%c0_14, %c0_15] : memref<8x32xf32, #tpu.memory_space<vmem>>, vector<8x32xf32>
    tpu.vector_store %arg10[%c0_14, %c0_15], %24 {strides = array<i32>} : memref<8x32xf32, #tpu.memory_space<vmem>>, vector<8x32xf32>,
    %c0_16 = arith.constant 0 : index
    %c0_17 = arith.constant 0 : index
    %c0_18 = arith.constant 0 : index
    %29 = vector.load %arg7[%c0_16, %c0_17, %c0_18] : memref<1x8x32xf32, #tpu.memory_space<vmem>>, vector<1x8x32xf32>
    %30 = vector.shape_cast %29 : vector<1x8x32xf32> to vector<8x32xf32>
    %31 = vector.shape_cast %26 : vector<8x32xf32> to vector<1x8x32xf32>
    tpu.vector_store %arg7[%c0_16, %c0_17, %c0_18], %31 {strides = array<i32>} : memref<1x8x32xf32, #tpu.memory_space<vmem>>, vector<1x8x32xf32>,
    %c0_19 = arith.constant 0 : index
    %c0_20 = arith.constant 0 : index
    %c0_21 = arith.constant 0 : index
    %32 = vector.load %arg8[%c0_19, %c0_20, %c0_21] : memref<1x8x32xf32, #tpu.memory_space<vmem>>, vector<1x8x32xf32>
    %33 = vector.shape_cast %32 : vector<1x8x32xf32> to vector<8x32xf32>
    %34 = vector.shape_cast %24 : vector<8x32xf32> to vector<1x8x32xf32>
    tpu.vector_store %arg8[%c0_19, %c0_20, %c0_21], %34 {strides = array<i32>} : memref<1x8x32xf32, #tpu.memory_space<vmem>>, vector<1x8x32xf32>,
    return
  }
  func.func @transform_0(%arg0: i32, %arg1: i32) -> (i32, i32, i32) {
    %c0_i32 = arith.constant 0 : i32
    %c0_i32_0 = arith.constant 0 : i32
    return %arg1, %arg0, %c0_i32 : i32, i32, i32
  }
  func.func @transform_1(%arg0: i32, %arg1: i32) -> (i32, i32) {
    %c0_i32 = arith.constant 0 : i32
    %c0_i32_0 = arith.constant 0 : i32
    %c0_i32_1 = arith.constant 0 : i32
    return %c0_i32, %c0_i32_0 : i32, i32
  }
  func.func @transform_2(%arg0: i32, %arg1: i32) -> (i32, i32) {
    %c0_i32 = arith.constant 0 : i32
    %c0_i32_0 = arith.constant 0 : i32
    %c0_i32_1 = arith.constant 0 : i32
    return %c0_i32, %c0_i32_0 : i32, i32
  }
  func.func @transform_3(%arg0: i32, %arg1: i32) -> (i32, i32) {
    %c0_i32 = arith.constant 0 : i32
    %c0_i32_0 = arith.constant 0 : i32
    return %arg0, %c0_i32 : i32, i32
  }
  func.func @transform_4(%arg0: i32, %arg1: i32) -> (i32, i32) {
    %c0_i32 = arith.constant 0 : i32
    %c0_i32_0 = arith.constant 0 : i32
    return %arg0, %c0_i32 : i32, i32
  }
  func.func @transform_5(%arg0: i32, %arg1: i32) -> (i32, i32, i32) {
    %c0_i32 = arith.constant 0 : i32
    %c0_i32_0 = arith.constant 0 : i32
    return %arg1, %arg0, %c0_i32 : i32, i32, i32
  }
  func.func @transform_6(%arg0: i32, %arg1: i32) -> (i32, i32, i32) {
    %c0_i32 = arith.constant 0 : i32
    %c0_i32_0 = arith.constant 0 : i32
    return %arg1, %arg0, %c0_i32 : i32, i32, i32
  }
}

</mosaic_0001>

<bundles_post_ra>
// kernel: tpu_custom_call.1
= control target key start
LH: loop header
LB: loop body
LE: loop exit
PB: predicated region body
PF: predicated region fallthrough
CT: control target
= control target key end

     0   :  { %12 = vsyncpa [#allocation5], 0  ;;  %s1054_s0 = inlined_call_operand.hbm [shape: f32[1,8,128], index: 0, kind: input, shape index: {}]   ;;  %s1055_s1 = inlined_call_operand.hbm [shape: f32[32,128], index: 1, kind: input, shape index: {}]   ;;  %s1056_s2 = inlined_call_operand.vmem [shape: f32[1,128], index: 2, kind: input, shape index: {}]   ;;  %s1057_s3 = inlined_call_operand.hbm [shape: f32[8,32], index: 3, kind: input, shape index: {}]   ;;  %s1058_s4 = inlined_call_operand.hbm [shape: f32[8,32], index: 4, kind: input, shape index: {}]   ;;  %s1059_s5 = inlined_call_operand.hbm [shape: f32[1,8,32], index: 5, kind: output, shape index: {0}]   ;;  %s1060_s6 = inlined_call_operand.hbm [shape: f32[1,8,32], index: 6, kind: output, shape index: {1}]  }
   0x1   :  { %13 = vsyncpa [#allocation8], 0 }
   0x2   :  { %14 = vsyncpa [#allocation11], 0 }
   0x3   :  { %15 = vsyncpa [#allocation6], 0 }
   0x4   :  { %16 = vsyncpa [#allocation14], 0  ;;  %s903_s21 = smov [#allocation7]  }
   0x5   :  { %s32_s22 = sshll.u32 %s903_s21, 4  ;;  %s33_s22 = int_to_ptr.vmem [resolvable:$true] %s32_s22 }
   0x6   :  { %s781_s23 = scalar_lea.vmem %s33_s22, 512  ;;  %p786_p1 = scmp.lt.s32.totalorder %s33_s22, %s33_s22 }
   0x7   :  { %p782_p0 = scmp.ne.s32.totalorder %s33_s22, %s781_s23  ;;  %p787_p2 = scmp.lt.s32.totalorder %s781_s23, %s781_s23 }
   0x9   :  { %p788_p3 = por %p787_p2, %p786_p1 }
   0xb   :  { %p789_p4 = pnand %p788_p3, %p782_p0 }
   0xd   :  { %792 = shalt.err (!%p789_p4)
}
   0xe   :  { %s904_s24 = smov 128   ;;  %s905_s25 = smov 8  }
   0xf   :  { %38 = dma.hbm_to_vmem [thread:$0]  %s1055_s1, 512, %s33_s22, [#allocation8], %s904_s24, %s904_s24, %s905_s25  }
  0x10   :  { %s906_s28 = smov [#allocation4]   ;;  %s907_s30 = smov [#allocation9]  }
  0x11   :  { %s23_s29 = sshll.u32 %s906_s28, 4  ;;  %s47_s7 = sshll.u32 %s907_s30, 4  ;;  %s24_s29 = int_to_ptr.vmem [resolvable:$true] %s23_s29  ;;  %s48_s7 = int_to_ptr.vmem [resolvable:$true] %s47_s7 }
  0x12   :  { %s801_s8 = scalar_lea.vmem %s24_s29, 128  ;;  %p806_p6 = scmp.lt.s32.totalorder %s24_s29, %s24_s29 }
  0x13   :  { %p802_p5 = scmp.ne.s32.totalorder %s24_s29, %s801_s8  ;;  %p807_p7 = scmp.lt.s32.totalorder %s801_s8, %s801_s8 }
  0x15   :  { %p808_p8 = por %p807_p7, %p806_p6 }
  0x17   :  { %p809_p9 = pnand %p808_p8, %p802_p5 }
  0x19   :  { %812 = shalt.err (!%p809_p9)
}
  0x1a   :  { %26 = dma.hbm_to_vmem [thread:$0]  %s1054_s0, 128, %s24_s29, [#allocation5]  }
  0x1b   :  { %s821_s11 = scalar_lea.vmem %s48_s7, 128  ;;  %p826_p11 = scmp.lt.s32.totalorder %s48_s7, %s48_s7 }
  0x1c   :  { %p822_p10 = scmp.ne.s32.totalorder %s48_s7, %s821_s11  ;;  %p827_p12 = scmp.lt.s32.totalorder %s821_s11, %s821_s11 }
  0x1e   :  { %p828_p13 = por %p827_p12, %p826_p11 }
  0x20   :  { %p829_p0 = pnand %p828_p13, %p822_p10 }
  0x22   :  { %832 = shalt.err (!%p829_p0)
}
  0x23   :  { %50 = dma.hbm_to_vmem [thread:$0]  %s1057_s3, 128, %s48_s7, [#allocation8]  }
  0x24   :  { %s908_s13 = smov [#allocation10]  }
  0x25   :  { %s57_s14 = sshll.u32 %s908_s13, 4  ;;  %s58_s14 = int_to_ptr.vmem [resolvable:$true] %s57_s14 }
  0x26   :  { %s841_s15 = scalar_lea.vmem %s58_s14, 128  ;;  %p846_p2 = scmp.lt.s32.totalorder %s58_s14, %s58_s14 }
  0x27   :  { %p842_p1 = scmp.ne.s32.totalorder %s58_s14, %s841_s15  ;;  %p847_p3 = scmp.lt.s32.totalorder %s841_s15, %s841_s15 }
  0x29   :  { %p848_p4 = por %p847_p3, %p846_p2 }
  0x2b   :  { %p849_p5 = pnand %p848_p4, %p842_p1 }
  0x2d   :  { %852 = shalt.err (!%p849_p5)
}
  0x2e   :  { %60 = dma.hbm_to_vmem [thread:$0]  %s1058_s4, 128, %s58_s14, [#allocation11]  }
  0x2f   :  { %893 = dma.done.wait [#allocation5], 128  }
  0x30   :  { %894 = vsyncadd [#allocation5], 4294967168 }
  0x31   :  { %895 = dma.done.wait [#allocation8], 640  }
  0x32   :  { %896 = vsyncadd [#allocation8], 4294966656 }
  0x33   :  { %897 = dma.done.wait [#allocation11], 128  }
  0x34   :  { %898 = vsyncadd [#allocation11], 4294967168  ;;  %v909_v0 = vmov 0.0   ;;  %vm910_vm0 = vmmov 0   ;;  %vm78_vm1 = vcmask 261120   ;;  %v86_v1 = vld [vmem:[#allocation7 + $0x18] sm:$0xff] }
  0x35   :  { %688 = vmatprep.subr.mxu0 %v909_v0  ;;  %699 = vmatprep.subr.mxu1 %v909_v0  ;;  %v85_v2 = vld [vmem:[#allocation7 + $0x10] sm:$0xff]  ;;  %v84_v3 = vld [vmem:[#allocation7 + $0x8] sm:$0xff]  ;;  %v969_v4 = vand.u32 4294901760, %v86_v1  ;;  %v83_v7 = vld [vmem:[#allocation7] sm:$0xff]  ;;  %s911_s17 = smov 64   ;;  %s912_s18 = smov 32  }
  0x36   :  { %696 = vmatprep.mubr.msk.f32.mxu0 %vm910_vm0, %v909_v0  ;;  %707 = vmatprep.mubr.msk.f32.mxu1 %vm910_vm0, %v909_v0  ;;  %v971_v5 = vand.u32 4294901760, %v85_v2  ;;  %v973_v6 = vand.u32 4294901760, %v84_v3  ;;  %v77_v8 = vld [vmem:[#allocation9] sm:$0xff]  ;;  %v975_v9 = vand.u32 4294901760, %v83_v7  ;;  %v80_v33 = vld [vmem:[#allocation10] sm:$0xff]  ;;  %v87_v38 = vld [vmem:[#allocation4] sm:$0xff] }
  0x37   :  { %79 = vst.msk [vmem:[#allocation2] sm:$0xff] %vm78_vm1, %v77_v8  ;;  %689 = vmatpush3.msra.mxu0 %v969_v4  ;;  %v197_v10 = vsub.f32 %v86_v1, %v969_v4  ;;  %81 = vst.msk [vmem:[#allocation3] sm:$0xff] %vm78_vm1, %v80_v33  ;;  %v656_v50 = vld [vmem:[%s1056_s2] ss:$0 sm:$0xff]  ;;  %s913_s2 = smov 96   ;;  %s914_s19 = smov [#allocation13]  }
  0x38   :  { %v981_v11 = vsub.f32 %v85_v2, %v971_v5  ;;  %v984_v12 = vsub.f32 %v84_v3, %v973_v6  ;;  %690 = vmatprep.subr.mxu0 %v909_v0  ;;  %v988_v13 = vsub.f32 %v83_v7, %v975_v9  ;;  %s641_s20 = sshll.u32 %s914_s19, 4  ;;  %s642_s20 = int_to_ptr.vmem [resolvable:$true] %s641_s20 }
  0x39   :  { %v198_v14 = vand.u32 4294901760, %v197_v10  ;;  %691 = vmatpush3.msra.mxu0 %v971_v5  ;;  %s853_s21 = scalar_lea.vmem %s642_s20, 128  ;;  %p858_p7 = scmp.lt.s32.totalorder %s642_s20, %s642_s20 }
  0x3a   :  { %v205_v15 = vand.u32 4294901760, %v981_v11  ;;  %v212_v16 = vand.u32 4294901760, %v984_v12  ;;  %692 = vmatprep.subr.mxu0 %v909_v0  ;;  %v219_v17 = vand.u32 4294901760, %v988_v13  ;;  %p854_p6 = scmp.ne.s32.totalorder %s642_s20, %s853_s21  ;;  %p859_p8 = scmp.lt.s32.totalorder %s853_s21, %s853_s21 }
  0x3b   :  { %v199_v18 = vsub.f32 %v197_v10, %v198_v14  ;;  %693 = vmatpush3.msra.mxu0 %v973_v6 }
  0x3c   :  { %v206_v19 = vsub.f32 %v981_v11, %v205_v15  ;;  %v213_v20 = vsub.f32 %v984_v12, %v212_v16  ;;  %694 = vmatprep.subr.mxu0 %v909_v0  ;;  %v220_v23 = vsub.f32 %v988_v13, %v219_v17  ;;  %p860_p9 = por %p859_p8, %p858_p7 }
  0x3d   :  { %v200_v21 = vand.u32 4294901760, %v199_v18  ;;  %695 = vmatpush3.msra.mxu0 %v975_v9 }
  0x3e   :  { %v207_v22 = vand.u32 4294901760, %v206_v19  ;;  %v82_v24 = vld [vmem:[#allocation2] sm:$0xff]  ;;  %710 = vmatprep.subr.mxu0 %v909_v0  ;;  %v214_v26 = vand.u32 4294901760, %v213_v20  ;;  %v221_v28 = vand.u32 4294901760, %v220_v23  ;;  %v591_v59 = vld [vmem:[#allocation3] sm:$0xff]  ;;  %p861_p10 = pnand %p860_p9, %p854_p6 }
  0x3f   :  { %v90_v25 = vsel %vm78_vm1, %v82_v24, 0  ;;  %700 = vmatpush3.msra.mxu1 %v200_v21 }
  0x40   :  { %v161_v27 = vand.u32 4294901760, %v90_v25  ;;  %701 = vmatprep.subr.mxu1 %v909_v0 }
  0x41   :  { %702 = vmatpush3.msra.mxu1 %v207_v22 }
  0x42   :  { %v162_v29 = vsub.f32 %v90_v25, %v161_v27  ;;  %703 = vmatprep.subr.mxu1 %v909_v0 }
  0x43   :  { %704 = vmatpush3.msra.mxu1 %v214_v26 }
  0x44   :  { %v163_v30 = vand.u32 4294901760, %v162_v29  ;;  %705 = vmatprep.subr.mxu1 %v909_v0 }
  0x45   :  { %706 = vmatpush3.msra.mxu1 %v221_v28 }
  0x46   :  { %v164_v31 = vsub.f32 %v162_v29, %v163_v30  ;;  %721 = vmatprep.subr.mxu1 %v909_v0  ;;  %708 = vmatmul.mubr.f32.vlgmr.msra.gmra.mxu1 %v161_v27 }
  0x47   :  { %722 = vmatpush3.msra.mxu1 %v969_v4  ;;  %729 = vmatprep.mubr.msk.f32.mxu1 %vm910_vm0, %v909_v0 }
  0x48   :  { %v165_v32 = vand.u32 4294901760, %v164_v31  ;;  %723 = vmatprep.subr.mxu1 %v909_v0 }
  0x49   :  { %724 = vmatpush3.msra.mxu1 %v971_v5 }
  0x4a   :  { %697 = vmatmul.mubr.f32.vlgmr.msra.gmra.mxu0 %v165_v32  ;;  %725 = vmatprep.subr.mxu1 %v909_v0 }
  0x4b   :  { %711 = vmatpush3.msra.mxu0 %v197_v10  ;;  %726 = vmatpush3.msra.mxu1 %v973_v6 }
  0x4c   :  { %712 = vmatprep.subr.mxu0 %v909_v0  ;;  %727 = vmatprep.subr.mxu1 %v909_v0 }
  0x4d   :  { %713 = vmatpush3.msra.mxu0 %v981_v11  ;;  %718 = vmatprep.mubr.msk.f32.mxu0 %vm910_vm0, %v909_v0 }
  0x4e   :  { %714 = vmatprep.subr.mxu0 %v909_v0  ;;  %728 = vmatpush3.msra.mxu1 %v975_v9 }
  0x4f   :  { %715 = vmatpush3.msra.mxu0 %v984_v12  ;;  %743 = vmatprep.subr.mxu1 %v909_v0 }
  0x50   :  { %716 = vmatprep.subr.mxu0 %v909_v0  ;;  %730 = vmatmul.mubr.f32.vlgmr.msra.gmra.mxu1 %v163_v30 }
  0x51   :  { %717 = vmatpush3.msra.mxu0 %v988_v13  ;;  %744 = vmatpush3.msra.mxu1 %v969_v4 }
  0x52   :  { %719 = vmatmul.mubr.f32.vlgmr.msra.gmra.mxu0 %v162_v29  ;;  %732 = vmatprep.subr.mxu0 %v909_v0 }
  0x53   :  { %733 = vmatpush3.msra.mxu0 %v198_v14  ;;  %745 = vmatprep.subr.mxu1 %v909_v0 }
  0x54   :  { %734 = vmatprep.subr.mxu0 %v909_v0  ;;  %746 = vmatpush3.msra.mxu1 %v971_v5 }
  0x55   :  { %735 = vmatpush3.msra.mxu0 %v205_v15  ;;  %747 = vmatprep.subr.mxu1 %v909_v0 }
  0x56   :  { %736 = vmatprep.subr.mxu0 %v909_v0  ;;  %748 = vmatpush3.msra.mxu1 %v973_v6 }
  0x57   :  { %737 = vmatpush3.msra.mxu0 %v212_v16  ;;  %749 = vmatprep.subr.mxu1 %v909_v0 }
  0x58   :  { %738 = vmatprep.subr.mxu0 %v909_v0  ;;  %740 = vmatprep.mubr.msk.f32.mxu0 %vm910_vm0, %v909_v0 }
  0x59   :  { %739 = vmatpush3.msra.mxu0 %v219_v17  ;;  %750 = vmatpush3.msra.mxu1 %v975_v9 }
  0x5a   :  { %751 = vmatprep.mubr.msk.f32.mxu1 %vm910_vm0, %v909_v0  ;;  %741 = vmatmul.mubr.f32.vlgmr.msra.gmra.mxu0 %v161_v27 }
  0x5b   :  { %752 = vmatmul.mubr.f32.vlgmr.msra.gmra.mxu1 %v161_v27 }
 0x106   :  { %v258_v34 = vpop.f32.mrf.mxu1 }
 0x108   :  { %v709_v35 = vpop.f32.mrf.mxu1 }
 0x10a   :  { %v167_v36 = vpop.f32.mrf.mxu0 }
 0x10b   :  { %v168_v39 = vadd.f32 %v167_v36, %v87_v38 }
 0x10c   :  { %v698_v37 = vpop.f32.mrf.mxu0 }
 0x10d   :  { %v259_v43 = vadd.f32 %v258_v34, %v168_v39 }
 0x110   :  { %v415_v40 = vpop.f32.mrf.mxu1 }
 0x112   :  { %v338_v41 = vpop.f32.mrf.mxu0  ;;  %v731_v42 = vpop.f32.mrf.mxu1 }
 0x113   :  { %v339_v45 = vadd.f32 %v338_v41, %v259_v43 }
 0x114   :  { %v720_v44 = vpop.f32.mrf.mxu0 }
 0x115   :  { %v416_v46 = vadd.f32 %v415_v40, %v339_v45 }
 0x11a   :  { %v498_v47 = vpop.f32.mrf.mxu0 }
 0x11b   :  { %v573_v48 = vpop.f32.mrf.mxu1  ;;  %v499_v49 = vadd.f32 %v498_v47, %v416_v46 }
 0x11c   :  { %v742_v51 = vpop.f32.mrf.mxu0 }
 0x11d   :  { %v753_v52 = vpop.f32.mrf.mxu1  ;;  %v574_v53 = vadd.f32 %v573_v48, %v499_v49 }
 0x11f   :  { %v584_v54 = vadd.f32 %v656_v50, %v574_v53 }
 0x121   :  { %v657_v55 = vmul.f32 -1.442695, %v584_v54 }
 0x123   :  { %767 = vpow2.f32 %v657_v55 }
 0x130   :  { %v768_v56 = vpop.eup %767 }
 0x131   :  { %v588_v57 = vadd.f32 1.0, %v768_v56 }
 0x133   :  { %769 = vrcp.f32 %v588_v57 }
 0x140   :  { %v770_v58 = vpop.eup %769 }
 0x141   :  { %598 = vrot.lane.b32.xlu0 %v770_v58, %s911_s17 }
 0x145   :  { %593 = vrot.lane.b32.xlu0 %v591_v59, %s912_s18 }
 0x1b3   :  { %v599_v60 = vpop.permute.xlu0 %598 }
 0x1b4   :  { %v601_v61 = vmul.f32 %v770_v58, %v599_v60 }
 0x1b6   :  { %603 = vrot.lane.b32.xlu1 %v601_v61, %s912_s18 }
 0x1b7   :  { %v594_v62 = vpop.permute.xlu0 %593 }
 0x1b8   :  { %v596_v63 = vmul.f32 %v770_v58, %v594_v62 }
 0x228   :  { %v604_v0 = vpop.permute.xlu1 %603 }
 0x229   :  { %v606_v1 = vadd.f32 %v604_v0, %v596_v63 }
 0x22b   :  { %771 = vtanh.f32 %v606_v1 }
 0x238   :  { %v772_v2 = vpop.eup %771 }
 0x239   :  { %609 = vrot.lane.b32.xlu1 %v772_v2, %s911_s17 }
 0x23d   :  { %619 = vrot.lane.b32.xlu1 %v606_v1, %s913_s2 }
 0x2ab   :  { %v610_v3 = vpop.permute.xlu1 %609 }
 0x2ac   :  { %v612_v4 = vadd.f32 %v770_v58, %v610_v3 }
 0x2ae   :  { %614 = vrot.lane.b32.xlu0 %v612_v4, %s912_s18 }
 0x2af   :  { %v620_v5 = vpop.permute.xlu1 %619 }
 0x2b0   :  { %622 = vst.msk [vmem:[#allocation3] sm:$0xff] %vm78_vm1, %v620_v5  ;;  %624 = vst.msk [vmem:[#allocation13] sm:$0xff] %vm78_vm1, %v620_v5 }
 0x2b1   :  { %864 = shalt.err (!%p861_p10)
}
 0x2b2   :  { %644 = dma.vmem_to_hbm [thread:$0]  %s642_s20, 128, %s1060_s6, [#allocation14]  }
 0x2b3   :  { %s915_s24 = smov [#allocation12]  }
 0x2b4   :  { %s631_s25 = sshll.u32 %s915_s24, 4  ;;  %s632_s25 = int_to_ptr.vmem [resolvable:$true] %s631_s25 }
 0x2b5   :  { %s873_s26 = scalar_lea.vmem %s632_s25, 128  ;;  %p878_p12 = scmp.lt.s32.totalorder %s632_s25, %s632_s25 }
 0x2b6   :  { %p874_p11 = scmp.ne.s32.totalorder %s632_s25, %s873_s26  ;;  %p879_p13 = scmp.lt.s32.totalorder %s873_s26, %s873_s26 }
 0x2b8   :  { %p880_p0 = por %p879_p13, %p878_p12 }
 0x2ba   :  { %p881_p1 = pnand %p880_p0, %p874_p11 }
 0x320   :  { %v615_v6 = vpop.permute.xlu0 %614 }
 0x321   :  { %617 = vst.msk [vmem:[#allocation2] sm:$0xff] %vm78_vm1, %v615_v6  ;;  %623 = vst.msk [vmem:[#allocation12] sm:$0xff] %vm78_vm1, %v615_v6 }
 0x322   :  { %884 = shalt.err (!%p881_p1)
}
 0x323   :  { %634 = dma.vmem_to_hbm [thread:$0]  %s632_s25, 128, %s1059_s5, [#allocation6]  }
 0x324   :  { %899 = dma.done.wait [#allocation6], 128  }
 0x325   :  { %900 = vsyncadd [#allocation6], 4294967168 }
 0x326   :  { %901 = dma.done.wait [#allocation14], 128  }
 0x327   :  { %902 = vsyncadd [#allocation14], 4294967168 }
 0x328   :  { %651 = vsyncpa [#allocation5], 1 }
 0x329   :  { %652 = vsyncpa [#allocation8], 1 }
 0x32a   :  { %653 = vsyncpa [#allocation11], 1 }
 0x32b   :  { %654 = vsyncpa [#allocation6], 1 }
 0x32c   :  { %655 = vsyncpa [#allocation14], 1 }

</bundles_post_ra>
